<compile_context>
chip_gen: v6e
topology: v6e:2x2x1
jax: 0.10.0
libtpu: 0.0.40
codegen_flags: <defaults>
</compile_context>

<pallas_src>
import functools

import jax
import jax.numpy as jnp
from jax import lax
from jax.experimental import pallas as pl
from jax.experimental.pallas import tpu as pltpu


def _choose_lane_tile(s, target):
    """Largest multiple of 128 that divides s and is <= target; else s."""
    if s % 128 != 0:
        # Unaligned feature map: use the full-extent lane block (allowed when
        # block == array dim) instead of materialising a padded copy in HBM.
        return s
    best = 128
    d = 256
    while d <= min(s, target):
        if s % d == 0:
            best = d
        d += 128
    return best


def _yolo_decode_kernel(p_ref, io_ref, *, stride, nx, anchors):
    """Decode one (na, no, LT) lane tile of one batch image.

    Row layout along `no`: 0=x, 1=y, 2=w, 3=h, 4.. = obj/cls.
    """
    na, no_b, lt = io_ref.shape
    lane_off = pl.program_id(1) * lt

    # Sublane (row) index and global spatial (lane) index for this tile.
    row = lax.broadcasted_iota(jnp.int32, (no_b, lt), 0)
    col = (lax.broadcasted_iota(jnp.int32, (no_b, lt), 1) + lane_off
           ).astype(jnp.float32)

    # gy = col // nx, gx = col % nx -- exact via f32 divide + +/-1 fixup
    # (all values are integers < 2^24, so every product/compare is exact).
    fnx = float(nx)
    gy = jnp.floor(col / fnx)
    gy = jnp.where(gy * fnx > col, gy - 1.0, gy)
    gy = jnp.where((gy + 1.0) * fnx <= col, gy + 1.0, gy)
    gx = col - gy * fnx
    g = jnp.where(row == 0, gx, gy) * stride          # only rows 0/1 consume it

    is_xy = row < 2
    is_wh = jnp.logical_and(row >= 2, row < 4)

    for a in range(na):                               # static, small (na ~ 3)
        aw, ah = anchors[a]                           # python floats -> consts
        anchor = jnp.where(row == 2, aw, ah)          # only rows 2/3 consume it
        x = p_ref[a].astype(jnp.float32)              # full (no, LT) slab load
        sig = jax.nn.sigmoid(x)
        xy = sig * stride + g                         # (sigmoid(p) + grid) * stride
        wh = jnp.exp(x) * anchor                      # exp(p) * anchor_vec * stride
        io_ref[a] = jnp.where(is_xy, xy, jnp.where(is_wh, wh, sig))


class YOLOLayerPallas:
    """JAX/Pallas port of models.YOLOLayer (eval-mode forward)."""

    def __init__(self, anchors, nc, img_size, yolo_index, lane_tile_target=2048):
        self.anchors_py = tuple((float(a[0]), float(a[1])) for a in anchors)
        self.anchors = jnp.asarray(anchors, dtype=jnp.float32)   # (na, 2)
        self.index = yolo_index
        self.na = len(anchors)
        self.nc = nc
        self.no = nc + 5
        self.img_size = img_size
        self.lane_tile_target = int(lane_tile_target)

    def __call__(self, p, img_size, want_p=True, lane_dense_io=False):
        bs, ch, ny, nx = p.shape
        assert ch == self.na * self.no
        S = ny * nx
        stride = float(max(img_size)) / float(max(nx, ny))
        lt = _choose_lane_tile(S, self.lane_tile_target)
        n_tiles = S // lt

        # NCHW -> (bs, na, no, S): contiguous reshape, no HBM data movement.
        p_flat = p.reshape(bs, self.na, self.no, S)

        kernel = functools.partial(
            _yolo_decode_kernel, stride=stride, nx=nx, anchors=self.anchors_py)

        block = (None, self.na, self.no, lt)
        io_flat = pl.pallas_call(
            kernel,
            out_shape=jax.ShapeDtypeStruct(
                (bs, self.na, self.no, S), jnp.float32),
            grid_spec=pltpu.PrefetchScalarGridSpec(
                num_scalar_prefetch=0,
                grid=(bs, n_tiles),
                in_specs=[pl.BlockSpec(block, lambda b, t: (b, 0, 0, t))],
                out_specs=pl.BlockSpec(block, lambda b, t: (b, 0, 0, t)),
            ),
            compiler_params=pltpu.CompilerParams(
                dimension_semantics=("parallel", "parallel")),
        )(p_flat)

        # Training view of p -- only materialised when the caller wants it
        # (it is a full extra HBM read+write pass over the raw predictions).
        p_perm = None
        if want_p:
            p_perm = jnp.transpose(
                p.reshape(bs, self.na, self.no, ny, nx), (0, 1, 3, 4, 2))

        if lane_dense_io:
            # (bs, na, no, ny*nx): lets downstream consumers (head concat /
            # NMS) fuse the permute instead of paying an extra HBM pass.
            return io_flat, p_perm

        # PyTorch convention: (bs, na, no, ny, nx) -> (bs, na, ny, nx, no)
        # -> (bs, -1, no).  One extra XLA pass; pass lane_dense_io=True to
        # avoid it when the consumer can take the lane-dense layout.
        io = jnp.transpose(
            io_flat.reshape(bs, self.na, self.no, ny, nx), (0, 1, 3, 4, 2)
        ).reshape(bs, -1, self.no)
        return io, p_perm


def _reference(p, anchors, nc, img_size):
    """Pure-JAX reference of the eval-mode forward, for checking."""
    bs, _, ny, nx = p.shape
    na = anchors.shape[0]
    no = nc + 5
    stride = float(max(img_size)) / float(max(nx, ny))
    pv = jnp.transpose(p.reshape(bs, na, no, ny, nx), (0, 1, 3, 4, 2))
    yv, xv = jnp.meshgrid(jnp.arange(ny), jnp.arange(nx), indexing="ij")
    grid_xy = jnp.stack((xv, yv), 2).astype(jnp.float32).reshape(1, 1, ny, nx, 2)
    anchor_wh = (anchors / stride).reshape(1, na, 1, 1, 2).astype(jnp.float32)
    xy = (jax.nn.sigmoid(pv[..., :2]) + grid_xy) * stride
    wh = (jnp.exp(pv[..., 2:4]) * anchor_wh) * stride
    rest = jax.nn.sigmoid(pv[..., 4:])
    io = jnp.concatenate([xy, wh, rest], axis=-1)
    return io.reshape(bs, -1, no), pv


if __name__ == "__main__":
    # Small, deterministic setup consistent with the module:
    # 3 anchors, nc=3 -> no=8 -> 24 input channels; 16x16 feature map.
    anchors = [(10.0, 13.0), (16.0, 30.0), (33.0, 23.0)]
    nc = 3
    img_size = (64, 64)
    bs, ny, nx = 2, 16, 16
    na, no = len(anchors), nc + 5

    key = jax.random.PRNGKey(0)
    x = jax.random.normal(key, (bs, na * no, ny, nx), dtype=jnp.float32)

    # lane_tile_target=128 so the lane-tile grid axis is exercised (2 tiles).
    layer = YOLOLayerPallas(anchors, nc, img_size, yolo_index=0,
                            lane_tile_target=128)
    io, p_perm = layer(x, img_size)
    io = jax.block_until_ready(io)
    p_perm = jax.block_until_ready(p_perm)

    io_ref, p_ref = _reference(x, jnp.asarray(anchors, jnp.float32), nc, img_size)
    assert io.shape == (bs, na * ny * nx, no)
    assert p_perm.shape == (bs, na, ny, nx, no)
    assert jnp.allclose(io, io_ref, atol=1e-5, rtol=1e-5)
    assert jnp.allclose(p_perm, p_ref, atol=1e-6, rtol=1e-6)

    # Lane-dense / no-training-view fast path (for downstream fusion).
    io_ld, p_none = layer(x, img_size, want_p=False, lane_dense_io=True)
    io_ld = jax.block_until_ready(io_ld)
    assert p_none is None
    io_ld_ref = jnp.transpose(
        io_ref.reshape(bs, na, ny, nx, no), (0, 1, 4, 2, 3)
    ).reshape(bs, na, no, ny * nx)
    assert jnp.allclose(io_ld, io_ld_ref, atol=1e-5, rtol=1e-5)

    print("KERNEL_OK")
</pallas_src>

<mosaic_0001>
module attributes {stable_mosaic.version = 11 : i64} {
  func.func @_yolo_decode_kernel(%arg0: i32, %arg1: i32, %arg2: memref<1x3x8x128xf32, #tpu.memory_space<vmem>>, %arg3: memref<1x3x8x128xf32, #tpu.memory_space<vmem>>) attributes {dimension_semantics = [#tpu.dimension_semantics<parallel>, #tpu.dimension_semantics<parallel>], iteration_bounds = array<i64: 2, 2>, scalar_prefetch = 0 : i64, scratch_operands = 0 : i64, tpu.core_type = #tpu.core_type<tc>, window_params = [{transform_indices = @transform_0, window_bounds = array<i64: 1, 3, 8, 128>}, {transform_indices = @transform_1, window_bounds = array<i64: 1, 3, 8, 128>}]} {
    %c128_i32 = arith.constant 128 : i32
    %0 = arith.muli %arg1, %c128_i32 : i32
    %1 = tpu.iota {dimensions = array<i32: 0>} : vector<8x128xi32>
    %2 = tpu.iota {dimensions = array<i32: 1>} : vector<8x128xi32>
    %3 = vector.broadcast %0 : i32 to vector<8x128xi32>
    %4 = arith.addi %2, %3 : vector<8x128xi32>
    %5 = arith.sitofp %4 : vector<8x128xi32> to vector<8x128xf32>
    %cst = arith.constant 1.600000e+01 : f32
    %6 = vector.broadcast %cst : f32 to vector<8x128xf32>
    %7 = arith.divf %5, %6 : vector<8x128xf32>
    %8 = math.floor %7 : vector<8x128xf32>
    %cst_0 = arith.constant 1.600000e+01 : f32
    %9 = vector.broadcast %cst_0 : f32 to vector<8x128xf32>
    %10 = arith.mulf %8, %9 : vector<8x128xf32>
    %11 = arith.cmpf ogt, %10, %5 : vector<8x128xf32>
    %cst_1 = arith.constant 1.000000e+00 : f32
    %12 = vector.broadcast %cst_1 : f32 to vector<8x128xf32>
    %13 = arith.subf %8, %12 : vector<8x128xf32>
    %14 = arith.select %11, %13, %8 : vector<8x128xi1>, vector<8x128xf32>
    %cst_2 = arith.constant 1.000000e+00 : f32
    %15 = vector.broadcast %cst_2 : f32 to vector<8x128xf32>
    %16 = arith.addf %14, %15 : vector<8x128xf32>
    %cst_3 = arith.constant 1.600000e+01 : f32
    %17 = vector.broadcast %cst_3 : f32 to vector<8x128xf32>
    %18 = arith.mulf %16, %17 : vector<8x128xf32>
    %19 = arith.cmpf ole, %18, %5 : vector<8x128xf32>
    %cst_4 = arith.constant 1.000000e+00 : f32
    %20 = vector.broadcast %cst_4 : f32 to vector<8x128xf32>
    %21 = arith.addf %14, %20 : vector<8x128xf32>
    %22 = arith.select %19, %21, %14 : vector<8x128xi1>, vector<8x128xf32>
    %cst_5 = arith.constant 1.600000e+01 : f32
    %23 = vector.broadcast %cst_5 : f32 to vector<8x128xf32>
    %24 = arith.mulf %22, %23 : vector<8x128xf32>
    %25 = arith.subf %5, %24 : vector<8x128xf32>
    %c0_i32 = arith.constant 0 : i32
    %26 = vector.broadcast %c0_i32 : i32 to vector<8x128xi32>
    %27 = arith.cmpi eq, %1, %26 : vector<8x128xi32>
    %28 = arith.select %27, %25, %22 : vector<8x128xi1>, vector<8x128xf32>
    %cst_6 = arith.constant 4.000000e+00 : f32
    %29 = vector.broadcast %cst_6 : f32 to vector<8x128xf32>
    %30 = arith.mulf %28, %29 : vector<8x128xf32>
    %c2_i32 = arith.constant 2 : i32
    %31 = vector.broadcast %c2_i32 : i32 to vector<8x128xi32>
    %32 = arith.cmpi slt, %1, %31 : vector<8x128xi32>
    %c2_i32_7 = arith.constant 2 : i32
    %33 = vector.broadcast %c2_i32_7 : i32 to vector<8x128xi32>
    %34 = arith.cmpi sge, %1, %33 : vector<8x128xi32>
    %c4_i32 = arith.constant 4 : i32
    %35 = vector.broadcast %c4_i32 : i32 to vector<8x128xi32>
    %36 = arith.cmpi slt, %1, %35 : vector<8x128xi32>
    %37 = arith.andi %34, %36 : vector<8x128xi1>
    %c2_i32_8 = arith.constant 2 : i32
    %38 = vector.broadcast %c2_i32_8 : i32 to vector<8x128xi32>
    %39 = arith.cmpi eq, %1, %38 : vector<8x128xi32>
    %cst_9 = arith.constant 1.000000e+01 : f32
    %cst_10 = arith.constant 1.300000e+01 : f32
    %40 = vector.broadcast %cst_9 : f32 to vector<8x128xf32>
    %41 = vector.broadcast %cst_10 : f32 to vector<8x128xf32>
    %42 = arith.select %39, %40, %41 : vector<8x128xi1>, vector<8x128xf32>
    %c0 = arith.constant 0 : index
    %c0_11 = arith.constant 0 : index
    %c0_12 = arith.constant 0 : index
    %c0_13 = arith.constant 0 : index
    %43 = vector.load %arg2[%c0, %c0_11, %c0_12, %c0_13] : memref<1x3x8x128xf32, #tpu.memory_space<vmem>>, vector<1x1x8x128xf32>
    %44 = vector.shape_cast %43 : vector<1x1x8x128xf32> to vector<8x128xf32>
    %45 = arith.negf %44 : vector<8x128xf32>
    %46 = math.exp %45 : vector<8x128xf32>
    %cst_14 = arith.constant 1.000000e+00 : f32
    %47 = vector.broadcast %cst_14 : f32 to vector<8x128xf32>
    %48 = arith.addf %47, %46 : vector<8x128xf32>
    %49 = arith.divf %47, %48 : vector<8x128xf32>
    %cst_15 = arith.constant 4.000000e+00 : f32
    %50 = vector.broadcast %cst_15 : f32 to vector<8x128xf32>
    %51 = arith.mulf %49, %50 : vector<8x128xf32>
    %52 = arith.addf %51, %30 : vector<8x128xf32>
    %53 = math.exp %44 : vector<8x128xf32>
    %54 = arith.mulf %53, %42 : vector<8x128xf32>
    %55 = arith.select %37, %54, %49 : vector<8x128xi1>, vector<8x128xf32>
    %56 = arith.select %32, %52, %55 : vector<8x128xi1>, vector<8x128xf32>
    %c0_16 = arith.constant 0 : index
    %c0_17 = arith.constant 0 : index
    %c0_18 = arith.constant 0 : index
    %c0_19 = arith.constant 0 : index
    %57 = vector.load %arg3[%c0_16, %c0_17, %c0_18, %c0_19] : memref<1x3x8x128xf32, #tpu.memory_space<vmem>>, vector<1x1x8x128xf32>
    %58 = vector.shape_cast %57 : vector<1x1x8x128xf32> to vector<8x128xf32>
    %59 = vector.shape_cast %56 : vector<8x128xf32> to vector<1x1x8x128xf32>
    tpu.vector_store %arg3[%c0_16, %c0_17, %c0_18, %c0_19], %59 {strides = array<i32>} : memref<1x3x8x128xf32, #tpu.memory_space<vmem>>, vector<1x1x8x128xf32>,
    %c2_i32_20 = arith.constant 2 : i32
    %60 = vector.broadcast %c2_i32_20 : i32 to vector<8x128xi32>
    %61 = arith.cmpi eq, %1, %60 : vector<8x128xi32>
    %cst_21 = arith.constant 1.600000e+01 : f32
    %cst_22 = arith.constant 3.000000e+01 : f32
    %62 = vector.broadcast %cst_21 : f32 to vector<8x128xf32>
    %63 = vector.broadcast %cst_22 : f32 to vector<8x128xf32>
    %64 = arith.select %61, %62, %63 : vector<8x128xi1>, vector<8x128xf32>
    %c0_23 = arith.constant 0 : index
    %c1 = arith.constant 1 : index
    %c0_24 = arith.constant 0 : index
    %c0_25 = arith.constant 0 : index
    %65 = vector.load %arg2[%c0_23, %c1, %c0_24, %c0_25] : memref<1x3x8x128xf32, #tpu.memory_space<vmem>>, vector<1x1x8x128xf32>
    %66 = vector.shape_cast %65 : vector<1x1x8x128xf32> to vector<8x128xf32>
    %67 = arith.negf %66 : vector<8x128xf32>
    %68 = math.exp %67 : vector<8x128xf32>
    %cst_26 = arith.constant 1.000000e+00 : f32
    %69 = vector.broadcast %cst_26 : f32 to vector<8x128xf32>
    %70 = arith.addf %69, %68 : vector<8x128xf32>
    %71 = arith.divf %69, %70 : vector<8x128xf32>
    %cst_27 = arith.constant 4.000000e+00 : f32
    %72 = vector.broadcast %cst_27 : f32 to vector<8x128xf32>
    %73 = arith.mulf %71, %72 : vector<8x128xf32>
    %74 = arith.addf %73, %30 : vector<8x128xf32>
    %75 = math.exp %66 : vector<8x128xf32>
    %76 = arith.mulf %75, %64 : vector<8x128xf32>
    %77 = arith.select %37, %76, %71 : vector<8x128xi1>, vector<8x128xf32>
    %78 = arith.select %32, %74, %77 : vector<8x128xi1>, vector<8x128xf32>
    %c0_28 = arith.constant 0 : index
    %c1_29 = arith.constant 1 : index
    %c0_30 = arith.constant 0 : index
    %c0_31 = arith.constant 0 : index
    %79 = vector.load %arg3[%c0_28, %c1_29, %c0_30, %c0_31] : memref<1x3x8x128xf32, #tpu.memory_space<vmem>>, vector<1x1x8x128xf32>
    %80 = vector.shape_cast %79 : vector<1x1x8x128xf32> to vector<8x128xf32>
    %81 = vector.shape_cast %78 : vector<8x128xf32> to vector<1x1x8x128xf32>
    tpu.vector_store %arg3[%c0_28, %c1_29, %c0_30, %c0_31], %81 {strides = array<i32>} : memref<1x3x8x128xf32, #tpu.memory_space<vmem>>, vector<1x1x8x128xf32>,
    %c2_i32_32 = arith.constant 2 : i32
    %82 = vector.broadcast %c2_i32_32 : i32 to vector<8x128xi32>
    %83 = arith.cmpi eq, %1, %82 : vector<8x128xi32>
    %cst_33 = arith.constant 3.300000e+01 : f32
    %cst_34 = arith.constant 2.300000e+01 : f32
    %84 = vector.broadcast %cst_33 : f32 to vector<8x128xf32>
    %85 = vector.broadcast %cst_34 : f32 to vector<8x128xf32>
    %86 = arith.select %83, %84, %85 : vector<8x128xi1>, vector<8x128xf32>
    %c0_35 = arith.constant 0 : index
    %c2 = arith.constant 2 : index
    %c0_36 = arith.constant 0 : index
    %c0_37 = arith.constant 0 : index
    %87 = vector.load %arg2[%c0_35, %c2, %c0_36, %c0_37] : memref<1x3x8x128xf32, #tpu.memory_space<vmem>>, vector<1x1x8x128xf32>
    %88 = vector.shape_cast %87 : vector<1x1x8x128xf32> to vector<8x128xf32>
    %89 = arith.negf %88 : vector<8x128xf32>
    %90 = math.exp %89 : vector<8x128xf32>
    %cst_38 = arith.constant 1.000000e+00 : f32
    %91 = vector.broadcast %cst_38 : f32 to vector<8x128xf32>
    %92 = arith.addf %91, %90 : vector<8x128xf32>
    %93 = arith.divf %91, %92 : vector<8x128xf32>
    %cst_39 = arith.constant 4.000000e+00 : f32
    %94 = vector.broadcast %cst_39 : f32 to vector<8x128xf32>
    %95 = arith.mulf %93, %94 : vector<8x128xf32>
    %96 = arith.addf %95, %30 : vector<8x128xf32>
    %97 = math.exp %88 : vector<8x128xf32>
    %98 = arith.mulf %97, %86 : vector<8x128xf32>
    %99 = arith.select %37, %98, %93 : vector<8x128xi1>, vector<8x128xf32>
    %100 = arith.select %32, %96, %99 : vector<8x128xi1>, vector<8x128xf32>
    %c0_40 = arith.constant 0 : index
    %c2_41 = arith.constant 2 : index
    %c0_42 = arith.constant 0 : index
    %c0_43 = arith.constant 0 : index
    %101 = vector.load %arg3[%c0_40, %c2_41, %c0_42, %c0_43] : memref<1x3x8x128xf32, #tpu.memory_space<vmem>>, vector<1x1x8x128xf32>
    %102 = vector.shape_cast %101 : vector<1x1x8x128xf32> to vector<8x128xf32>
    %103 = vector.shape_cast %100 : vector<8x128xf32> to vector<1x1x8x128xf32>
    tpu.vector_store %arg3[%c0_40, %c2_41, %c0_42, %c0_43], %103 {strides = array<i32>} : memref<1x3x8x128xf32, #tpu.memory_space<vmem>>, vector<1x1x8x128xf32>,
    return
  }
  func.func @transform_0(%arg0: i32, %arg1: i32) -> (i32, i32, i32, i32) {
    %c0_i32 = arith.constant 0 : i32
    %c0_i32_0 = arith.constant 0 : i32
    %c0_i32_1 = arith.constant 0 : i32
    return %arg0, %c0_i32, %c0_i32_0, %arg1 : i32, i32, i32, i32
  }
  func.func @transform_1(%arg0: i32, %arg1: i32) -> (i32, i32, i32, i32) {
    %c0_i32 = arith.constant 0 : i32
    %c0_i32_0 = arith.constant 0 : i32
    %c0_i32_1 = arith.constant 0 : i32
    return %arg0, %c0_i32, %c0_i32_0, %arg1 : i32, i32, i32, i32
  }
}

</mosaic_0001>

<bundles_post_ra>
// kernel: tpu_custom_call.1
= control target key start
LH: loop header
LB: loop body
LE: loop exit
PB: predicated region body
PF: predicated region fallthrough
CT: control target
= control target key end

     0   :  { %6 = vsyncpa [#allocation3], 0  ;;  %s797_s0 = inlined_call_operand.hbm [shape: f32[2,3,8,256], index: 0, kind: input, shape index: {}]   ;;  %s798_s1 = inlined_call_operand.hbm [shape: f32[2,3,8,256], index: 1, kind: output, shape index: {}]  }
   0x1   :  { %8 = vsyncpa [#allocation3 + $0x1], 0 }
   0x2   :  { %9 = vsyncpa [#allocation4], 0 }
   0x3   :  { %11 = vsyncpa [#allocation4 + $0x1], 0  ;;  %s610_s6 = smov 0   ;;  %s612_s7 = smov 0  }
   0x4   :  { %s614_s8 = smov 0   ;;  %s616_s9 = smov 0  }
   0x5   :  { %s618_s10 = smov 0   ;;  %s620_s11 = smov 0  }
   0x6   :  { %s622_s12 = smov 0   ;;  %s624_s13 = smov 0  }
   0x7 LB: > { %s336_s14 = sadd.s32 4294967295, %s587_s13   ;;  %s337_s15 = sadd.s32 4294967294, %s587_s13   ;;  %s587_s13 = sphi %s624_s13, %s17_s13   ;;  %s583_s12 = sphi %s622_s12, %s815_s12   ;;  %s579_s11 = sphi %s620_s11, %s814_s11   ;;  %s575_s10 = sphi %s618_s10, %s813_s10   ;;  %s571_s9 = sphi %s616_s9, %s812_s9   ;;  %s567_s8 = sphi %s614_s8, %s811_s8   ;;  %s563_s7 = sphi %s612_s7, %s810_s7   ;;  %s559_s6 = sphi %s610_s6, %s809_s6  }
   0x8   : > { %s26_s16 = sadd.s32 1, %s579_s11  ;;  %s29_s17 = sadd.s32 1, %s583_s12 }
   0x9   : > { %p27_p0 = scmp.ge.s32.totalorder %s26_s16, 2  ;;  %s38_s18 = sadd.s32 1, %s567_s8 }
   0xa   : > { %p45_p1 = scmp.ne.s32.totalorder %s567_s8, %s563_s7  ;;  %p46_p2 = scmp.eq.s32.totalorder %s587_s13, 0 }
   0xb   : > { %s817_s16 = smov (%p27_p0, %s26_s16), 0  ;;  %s819_s17 = smov (!%p27_p0, %s29_s17), %s583_s12 }
   0xc   : > { %s34_s19 = ssub.s32 %s579_s11, %s817_s16  ;;  %p663_p3 = por %p46_p2, %p45_p1 }
   0xd   : > { %p31_p4 = scmp.ge.s32.totalorder %s819_s17, 2  ;;  %p51_p5 = scmp.ne.s32.totalorder %s563_s7, %s559_s6 }
   0xe   : > { %p52_p6 = scmp.eq.s32.totalorder %s336_s14, 0  ;;  %p77_p7 = scmp.eq.s32.totalorder %s336_s14, 3 }
   0xf   : > { %s821_s17 = smov (%p31_p4, %s819_s17), 0  ;;  %p83_p10 = scmp.eq.s32.totalorder %s337_s15, 3 }
  0x10   : > { %801 = sst [smem:[#allocation8_spill]] %s821_s17  ;;  %p671_p8 = por %p52_p6, %p51_p5 }
  0x11   : > { %p675_p9 = por %p77_p7, %p45_p1  ;;  %s33_s23 = ssub.s32 %s583_s12, %s821_s17 }
  0x12   : > { %s35_s24 = sor.u32 %s34_s19, %s33_s23  ;;  %p681_p12 = por %p83_p10, %p51_p5 }
  0x13   : > { %p36_p11 = scmp.eq.s32.totalorder %s35_s24, 0  ;;  %p370_p13 = scmp.lt.s32.totalorder %s587_s13, 4 }
  0x14   : > { %s103_s26 = sand.u32 1, %s567_s8   ;;  %s355_s29 = smul.u32 6, %s583_s12 }
  0x15   : > { %s688_s27 = scalar_select %p36_p11, %s567_s8, %s38_s18  }
  0x16   : > { %s354_s28 = smul.u32 24, %s103_s26  ;;  %p693_p0 = pnand %p370_p13, %p663_p3 }
  0x17   : > { %s112_s2 = sadd.s32 %s579_s11, %s355_s29  ;;  %s104_s23 = scalar_lea.sflag [#allocation3], %s103_s26 }
  0x18   : > { %s107_s3 = scalar_lea.vmem [#allocation2], %s354_s28  ;;  %s340_s5 = sshll.u32 %s112_s2, 7 }
  0x19   : > { %s115_s4 = sshll.u32 %s107_s3, 4  ;;  %s114_s19 = scalar_lea.hbm %s797_s0, %s340_s5  ;;  %s116_s4 = int_to_ptr.vmem [resolvable:$true] %s115_s4 }
  0x1a   : > { %p465_p1 = pneg %p693_p0  ;;  %s476_s18 = scalar_lea.vmem %s116_s4, 384 }
  0x1b   : > { %p477_p2 = scmp.ne.s32.totalorder %s116_s4, %s476_s18  ;;  %s589_s20 = smov [#allocation2]  }
  0x1c   : > { %s481_s24 = sshll.u32 %s589_s20, 4  ;;  %s482_s24 = int_to_ptr.vmem [resolvable:$false] %s481_s24 }
  0x1d   : > { %p479_p4 = pnand %p477_p2, %p465_p1  ;;  %s483_s17 = scalar_lea.vmem %s482_s24, 768 }
  0x1e   : > { %p484_p5 = scmp.lt.s32.totalorder %s116_s4, %s482_s24  ;;  %p485_p6 = scmp.lt.s32.totalorder %s483_s17, %s476_s18 }
  0x1f   : > { %p480_p3 = pneg %p479_p4 }
  0x20   : > { %p486_p7 = por %p485_p6, %p484_p5 }
  0x22   : > { %p487_p10 = pnand %p486_p7, %p480_p3 }
  0x24   : > { %490 = shalt.err (!%p487_p10)
}
  0x25   : > { %s590_s28 = smov 256   ;;  %s591_s26 = smov 128  }
  0x26   : > { %s592_s29 = smov 8   ;;  %p341_p11 = scmp.ge.s32.totalorder %s587_s13, 1 }
  0x27   : > { %365 = dma.hbm_to_vmem [thread:$0]  (!%p693_p0), %s114_s19, 384, %s116_s4, %s104_s23, %s590_s28, %s591_s26, %s592_s29  }
  0x28   : > { %p123_p13 = scmp.lt.s32.totalorder %s587_s13, 5 }
  0x2a   : > { %p124_p1 = pnand %p341_p11, %p123_p13 }
  0x2b   : > { %s708_s2 = sand.u32 (!%p124_p1), 1, %s563_s7  }
  0x2c   : > { %127 = sbr.rel (%p124_p1) target bundleno = 105 (0x69), region = 24  ;;  %s130_s3 = scalar_lea.sflag (!%p124_p1), [#allocation3], %s708_s2 }
  0x2d   : > { %s356_s17 = smul.u32 (!%p124_p1), 24, %s708_s2 }
  0x2f   : > { %s133_s5 = scalar_lea.vmem (!%p124_p1), [#allocation2], %s356_s17 }
  0x31   : > { %550 = dma.done.wait (%p671_p8), %s130_s3, 384  }
  0x32   : > { %552 = vsyncadd (%p671_p8), %s130_s3, 4294966912  ;;  %s342_s30 = sshll.u32 %s571_s9, 7  ;;  %v153_v0 = vlaneseq  ;;  %v182_v5 = vld [vmem:[%s133_s5] sm:$0xff]  ;;  %v345_v6 = vld [vmem:[%s133_s5 + $0x8] sm:$0xff]  ;;  %v593_v32 = vmov 13.0   ;;  %v594_v36 = vmov 30.0  }
  0x33   : > { %v157_v1 = vstv %s342_s30  ;;  %v348_v7 = vld [vmem:[%s133_s5 + $0x10] sm:$0xff]  ;;  %v344_v9 = vmul.f32 -1.442695, %v182_v5  ;;  %v346_v10 = vmul.f32 -1.442695, %v345_v6  ;;  %s357_s21 = smul.u32 6, %s575_s10 }
  0x34   : > { %v156_v2 = vand.u32 127, %v153_v0  ;;  %v349_v12 = vmul.f32 -1.442695, %v348_v7  ;;  %v191_v17 = vmul.f32 1.442695, %v182_v5  ;;  %v154_v27 = vshrl.u32 %v153_v0, 7 }
  0x35   : > { %445 = vpow2.f32 %v344_v9  ;;  %v208_v19 = vmul.f32 1.442695, %v345_v6  ;;  %v226_v20 = vmul.f32 1.442695, %v348_v7  ;;  %v595_v42 = vmov 23.0   ;;  %s245_s4 = sadd.s32 %s571_s9, %s357_s21  ;;  %s151_s10 = scalar_lea.vmem [#allocation5], %s356_s17 }
  0x36   : > { %v158_v3 = vadd.s32 %v157_v1, %v156_v2  ;;  %447 = vpow2.f32 %v346_v10  ;;  %vm180_vm2 = vcmp.eq.s32.totalorder %v154_v27, 2  ;;  %vm173_vm3 = vcmp.eq.s32.totalorder %v154_v27, 0  ;;  %s248_s14 = sshll.u32 %s151_s10, 4  ;;  %s351_s15 = sshll.u32 %s245_s4, 7  ;;  %s735_s14 = int_to_ptr.vmem [resolvable:$true] %s248_s14 }
  0x37   : > { %449 = vpow2.f32 %v349_v12  ;;  %v181_v33 = vsel %vm180_vm2, 10.0, %v593_v32  ;;  %vm177_vm4 = vcmp.ge.s32.totalorder %v154_v27, 2  ;;  %vm178_vm5 = vcmp.lt.s32.totalorder %v154_v27, 4  ;;  %s743_s23 = scalar_lea.hbm %s798_s1, %s351_s15  ;;  %s234_s18 = scalar_lea.sflag [#allocation4], %s708_s2 }
  0x38   : > { %v159_v4 = vcvt.s32.f32 %v158_v3  ;;  %451 = vpow2.f32 %v191_v17  ;;  %v197_v37 = vsel %vm180_vm2, 16.0, %v594_v36  ;;  %vm722_vm6 = vmand %vm177_vm4, %vm178_vm5  ;;  %v215_v43 = vsel %vm180_vm2, 33.0, %v595_v42  ;;  %s491_s20 = scalar_lea.vmem %s735_s14, 384  ;;  %s596_s24 = smov [#allocation5]  }
  0x39   : > { %453 = vpow2.f32 %v208_v19  ;;  %vm176_vm7 = vcmp.lt.s32.totalorder %v154_v27, 2  ;;  %p492_p8 = scmp.ne.s32.totalorder %s735_s14, %s491_s20  ;;  %s495_s28 = sshll.u32 %s596_s24, 4  ;;  %s496_s28 = int_to_ptr.vmem [resolvable:$false] %s495_s28 }
  0x3a   : > { %v161_v8 = vmul.f32 0.0625, %v159_v4  ;;  %455 = vpow2.f32 %v226_v20  ;;  %s497_s26 = scalar_lea.vmem %s496_s28, 768  ;;  %p498_p4 = scmp.lt.s32.totalorder %s735_s14, %s496_s28 }
  0x3b   : > { %p493_p0 = pnand %p492_p8, %p675_p9  ;;  %p499_p3 = scmp.lt.s32.totalorder %s497_s26, %s491_s20 }
  0x3c   : > { %v162_v11 = vfloor.f32 %v161_v8 }
  0x3d   : > { %p494_p2 = pneg %p493_p0  ;;  %p500_p5 = por %p499_p3, %p498_p4 }
  0x3e   : > { %v163_v13 = vmul.f32 16.0, %v162_v11  ;;  %v343_v14 = vadd.f32 -1.0, %v162_v11 }
  0x3f   : > { %p501_p6 = pnand %p500_p5, %p494_p2 }
  0x40   : > { %vm164_vm0 = vcmp.gt.f32.partialorder %v163_v13, %v159_v4 }
  0x41   : > { %v166_v15 = vsel %vm164_vm0, %v343_v14, %v162_v11 }
  0x42   : > { %v167_v16 = vadd.f32 1.0, %v166_v15  ;;  %v446_v21 = vpop.eup %445 }
  0x43   : > { %v186_v23 = vadd.f32 1.0, %v446_v21  ;;  %v448_v24 = vpop.eup %447 }
  0x44   : > { %v168_v18 = vmul.f32 16.0, %v167_v16  ;;  %v203_v25 = vadd.f32 1.0, %v448_v24  ;;  %v450_v26 = vpop.eup %449 }
  0x45   : > { %457 = vrcp.f32 %v186_v23  ;;  %v221_v29 = vadd.f32 1.0, %v450_v26  ;;  %v452_v31 = vpop.eup %451 }
  0x46   : > { %vm169_vm1 = vcmp.le.f32.partialorder %v168_v18, %v159_v4  ;;  %459 = vrcp.f32 %v203_v25  ;;  %v454_v35 = vpop.eup %453  ;;  %v193_v38 = vmul.f32 %v452_v31, %v181_v33 }
  0x47   : > { %v170_v22 = vsel %vm169_vm1, %v167_v16, %v166_v15  ;;  %461 = vrcp.f32 %v221_v29  ;;  %v456_v39 = vpop.eup %455  ;;  %v210_v45 = vmul.f32 %v454_v35, %v197_v37 }
  0x48   : > { %v171_v28 = vmul.f32 16.0, %v170_v22  ;;  %v228_v49 = vmul.f32 %v456_v39, %v215_v43 }
  0x4a   : > { %v172_v30 = vsub.f32 %v159_v4, %v171_v28 }
  0x4c   : > { %v174_v34 = vsel %vm173_vm3, %v172_v30, %v170_v22 }
  0x4d   : > { %v175_v40 = vmul.f32 4.0, %v174_v34 }
  0x52   : > { %v458_v44 = vpop.eup %457 }
  0x53   : > { %v189_v46 = vmul.f32 4.0, %v458_v44  ;;  %v460_v47 = vpop.eup %459  ;;  %v194_v48 = vsel %vm722_vm6, %v193_v38, %v458_v44 }
  0x54   : > { %v206_v51 = vmul.f32 4.0, %v460_v47  ;;  %v462_v52 = vpop.eup %461  ;;  %v211_v53 = vsel %vm722_vm6, %v210_v45, %v460_v47 }
  0x55   : > { %v190_v50 = vadd.f32 %v189_v46, %v175_v40  ;;  %v224_v56 = vmul.f32 4.0, %v462_v52  ;;  %v229_v57 = vsel %vm722_vm6, %v228_v49, %v462_v52 }
  0x56   : > { %v207_v55 = vadd.f32 %v206_v51, %v175_v40 }
  0x57   : > { %v195_v54 = vsel %vm176_vm7, %v190_v50, %v194_v48  ;;  %v225_v59 = vadd.f32 %v224_v56, %v175_v40 }
  0x58   : > { %196 = vst [vmem:[%s151_s10] sm:$0xff] %v195_v54  ;;  %v212_v58 = vsel %vm176_vm7, %v207_v55, %v211_v53 }
  0x59   : > { %347 = vst [vmem:[%s151_s10 + $0x8] sm:$0xff] %v212_v58  ;;  %v230_v60 = vsel %vm176_vm7, %v225_v59, %v229_v57 }
  0x5a   : > { %350 = vst [vmem:[%s151_s10 + $0x10] sm:$0xff] %v230_v60 }
  0x5b   : > { %504 = shalt.err (!%p501_p6)
}
  0x5c   : > { %s505_s29 = scalar_lea.hbm %s743_s23, 384  ;;  %s509_s5 = scalar_lea.hbm %s798_s1, 1536 }
  0x5d   : > { %p506_p7 = scmp.ne.s32.totalorder %s743_s23, %s505_s29  ;;  %p510_p13 = scmp.lt.s32.totalorder %s743_s23, %s798_s1 }
  0x5e   : > { %p511_p1 = scmp.lt.s32.totalorder %s509_s5, %s505_s29 }
  0x5f   : > { %p507_p10 = pnand %p506_p7, %p675_p9 }
  0x60   : > { %p512_p8 = por %p511_p1, %p510_p13 }
  0x61   : > { %p508_p11 = pneg %p507_p10 }
  0x63   : > { %p513_p0 = pnand %p512_p8, %p508_p11 }
  0x65   : > { %516 = shalt.err (!%p513_p0)
}
  0x66   : > { %s597_s4 = smov 128   ;;  %s598_s10 = smov 256  }
  0x67   : > { %s599_s15 = smov 8  }
  0x68   : > { %360 = dma.vmem_to_hbm [thread:$0]  (%p675_p9), %s735_s14, 384, %s743_s23, %s234_s18, %s597_s4, %s598_s10, %s599_s15  }
  0x69 PF: > { %p371_p2 = scmp.ge.s32.totalorder %s587_s13, 2  ;;  %s263_s9 = sand.u32 1, %s559_s6  }
  0x6a   : > { %s264_s19 = scalar_lea.sflag [#allocation4], %s263_s9 }
  0x6b   : > { %p367_p4 = pnand %p371_p2, %p681_p12 }
  0x6d   : > { %p368_p3 = pneg %p367_p4 }
  0x6f   : > { %554 = dma.done.wait (%p368_p3), %s264_s19, 384  }
  0x70   : > { %556 = vsyncadd (%p368_p3), %s264_s19, 4294966912  ;;  %s17_s13 = sadd.s32 1, %s587_s13   ;;  %s808_s22 = sld [smem:[#allocation8_spill]] }
  0x71   : > { %p14_p5 = scmp.ge.s32.totalorder %s17_s13, 6   ;;  %s809_s6 = smov %s563_s7 }
  0x72   : > { %s810_s7 = smov %s567_s8  ;;  %s811_s8 = smov %s688_s27 }
  0x73   : > { %s812_s9 = smov %s579_s11  ;;  %s813_s10 = smov %s583_s12 }
  0x74   : > { %s814_s11 = smov %s817_s16  ;;  %16 = sbr.rel (!%p14_p5) target bundleno = 7 (0x7), region = 73 }
  0x76   : > { %s815_s12 = smov %s808_s22 }
  0x79   :  { %269 = vsyncpa [#allocation3], 1 }
  0x7a   :  { %271 = vsyncpa [#allocation3 + $0x1], 1 }
  0x7b   :  { %272 = vsyncpa [#allocation4], 1 }
  0x7c   :  { %274 = vsyncpa [#allocation4 + $0x1], 1 }

</bundles_post_ra>
